<compile_context>
chip_gen: v6e
topology: v6e:2x2x1
jax: 0.10.0
libtpu: 0.0.40
codegen_flags: <defaults>
</compile_context>

<pallas_src>
import jax
import jax.numpy as jnp
from jax.experimental import pallas as pl
from jax.experimental.pallas import tpu as pltpu


def _round_up(x, m):
    return ((x + m - 1) // m) * m


# ----------------------------- Pallas kernel --------------------------------

def _conv1x1_kernel(x_ref, w_ref, b_ref, o_ref):
    # x_ref: (Cin_p, tm)   activations (pixels on lanes)
    # w_ref: (Cout_p, Cin_p) weight (padded to sublane multiples of 8)
    # b_ref: (Cout, 1)     bias
    # o_ref: (Cout, tm)    exact (unpadded) output channels
    acc = jnp.dot(w_ref[...], x_ref[...], preferred_element_type=jnp.float32)
    cout = o_ref.shape[0]
    o_ref[...] = (acc[:cout, :] + b_ref[...]).astype(o_ref.dtype)


# ------------------------------- wrapper -------------------------------------

def out_conv1x1(x_nchw, weight, bias, *, tm=1024):
    """Forward of nn.Conv2d(Cin, Cout, kernel_size=1) on NCHW f32 input.

    weight: (Cout, Cin, 1, 1) PyTorch conv weight (or already-squeezed (Cout, Cin)).
    bias:   (Cout,)
    """
    n, cin, h, w = x_nchw.shape
    w2d = weight.reshape(weight.shape[0], weight.shape[1])
    cout = w2d.shape[0]
    hw = h * w

    # Contiguous free view of NCHW: (N, Cin, H*W). No transpose.
    x3 = x_nchw.reshape(n, cin, hw)

    # Tile the pixel axis; keep tiles lane-aligned (multiple of 128).
    tm_eff = min(tm, _round_up(hw, 128))
    hw_p = _round_up(hw, tm_eff)

    # Pad contraction / weight-row dims to a sublane multiple of 8 (no-op for
    # typical UNet channel counts). Zero padding does not change the GEMM.
    cin_p = _round_up(cin, 8)
    cout_p = _round_up(cout, 8)

    if cin_p != cin or hw_p != hw:
        x3 = jnp.pad(x3, ((0, 0), (0, cin_p - cin), (0, hw_p - hw)))

    w_p = jnp.pad(w2d.astype(jnp.float32),
                  ((0, cout_p - cout), (0, cin_p - cin)))
    b2 = bias.astype(jnp.float32).reshape(cout, 1)

    grid = (n, hw_p // tm_eff)

    cost = pl.CostEstimate(
        flops=2 * n * hw_p * cin_p * cout_p,
        transcendentals=0,
        bytes_accessed=4 * (n * cin_p * hw_p + cout_p * cin_p + cout
                            + n * cout * hw_p),
    )

    out = pl.pallas_call(
        _conv1x1_kernel,
        out_shape=jax.ShapeDtypeStruct((n, cout, hw_p), jnp.float32),
        grid_spec=pltpu.PrefetchScalarGridSpec(
            num_scalar_prefetch=0,
            grid=grid,
            in_specs=[
                # activations: one batch, full Cin, one pixel tile
                pl.BlockSpec((None, cin_p, tm_eff), lambda b, j: (b, 0, j)),
                # weight / bias: constant blocks, stay resident in VMEM
                pl.BlockSpec((cout_p, cin_p), lambda b, j: (0, 0)),
                pl.BlockSpec((cout, 1), lambda b, j: (0, 0)),
            ],
            out_specs=pl.BlockSpec((None, cout, tm_eff), lambda b, j: (b, 0, j)),
        ),
        compiler_params=pltpu.CompilerParams(
            dimension_semantics=("parallel", "parallel"),
            vmem_limit_bytes=32 * 1024 * 1024,
        ),
        cost_estimate=cost,
    )(x3, w_p, b2)

    if hw_p != hw:
        out = out[:, :, :hw]
    return out.reshape(n, cout, h, w)


# --------------------------------- main ---------------------------------------

if __name__ == "__main__":
    B, CIN, COUT, H, W = 2, 4, 3, 16, 16

    key = jax.random.PRNGKey(0)
    kx, kw, kb = jax.random.split(key, 3)

    x = jax.random.normal(kx, (B, CIN, H, W), jnp.float32)
    # PyTorch Conv2d weight layout (Cout, Cin, 1, 1); init scale ~ 1/sqrt(fan_in).
    weight = jax.random.normal(kw, (COUT, CIN, 1, 1), jnp.float32) / jnp.sqrt(CIN)
    bias = 0.01 * jax.random.normal(kb, (COUT,), jnp.float32)

    fwd = jax.jit(lambda xx: out_conv1x1(xx, weight, bias))
    y = fwd(x)
    jax.block_until_ready(y)

    # Reference: plain-JAX 1x1 convolution.
    w2 = weight.reshape(COUT, CIN)
    ref = jnp.einsum("nchw,oc->nohw", x, w2) + bias[None, :, None, None]

    assert y.shape == (B, COUT, H, W), y.shape
    assert bool(jnp.all(jnp.isfinite(y)))
    assert jnp.allclose(y, ref, rtol=1e-4, atol=1e-4), float(
        jnp.max(jnp.abs(y - ref)))

    print("KERNEL_OK")
</pallas_src>

<mosaic_0001>
module attributes {stable_mosaic.version = 11 : i64} {
  func.func @_conv1x1_kernel(%arg0: i32, %arg1: i32, %arg2: memref<1x8x256xf32, #tpu.memory_space<vmem>>, %arg3: memref<8x8xf32, #tpu.memory_space<vmem>>, %arg4: memref<3x1xf32, #tpu.memory_space<vmem>>, %arg5: memref<1x3x256xf32, #tpu.memory_space<vmem>>) attributes {dimension_semantics = [#tpu.dimension_semantics<parallel>, #tpu.dimension_semantics<parallel>], iteration_bounds = array<i64: 2, 1>, scalar_prefetch = 0 : i64, scratch_operands = 0 : i64, tpu.core_type = #tpu.core_type<tc>, window_params = [{transform_indices = @transform_0, window_bounds = array<i64: 1, 8, 256>}, {pipeline_mode = #tpu.pipeline_mode<synchronous>, transform_indices = @transform_1, window_bounds = array<i64: 8, 8>}, {pipeline_mode = #tpu.pipeline_mode<synchronous>, transform_indices = @transform_2, window_bounds = array<i64: 3, 1>}, {transform_indices = @transform_3, window_bounds = array<i64: 1, 3, 256>}]} {
    %c0 = arith.constant 0 : index
    %c0_0 = arith.constant 0 : index
    %0 = vector.load %arg3[%c0, %c0_0] : memref<8x8xf32, #tpu.memory_space<vmem>>, vector<8x8xf32>
    %c0_1 = arith.constant 0 : index
    %c0_2 = arith.constant 0 : index
    %c0_3 = arith.constant 0 : index
    %1 = vector.load %arg2[%c0_1, %c0_2, %c0_3] : memref<1x8x256xf32, #tpu.memory_space<vmem>>, vector<1x8x256xf32>
    %2 = vector.shape_cast %1 : vector<1x8x256xf32> to vector<8x256xf32>
    %cst = arith.constant dense<0.000000e+00> : vector<8x256xf32>
    %3 = tpu.matmul %0, %2, %cst {dimension_numbers = #tpu.dot_dimension_numbers<[1], [0], [0], [1], [0, 0, 1, 1], [], []>} : vector<8x8xf32>, vector<8x256xf32>, vector<8x256xf32> -> vector<8x256xf32>
    %4 = vector.extract_strided_slice %3 {offsets = [0, 0], sizes = [3, 256], strides = [1, 1]} : vector<8x256xf32> to vector<3x256xf32>
    %c0_4 = arith.constant 0 : index
    %c0_5 = arith.constant 0 : index
    %5 = vector.load %arg4[%c0_4, %c0_5] : memref<3x1xf32, #tpu.memory_space<vmem>>, vector<3x1xf32>
    %6 = vector.broadcast %5 : vector<3x1xf32> to vector<3x256xf32>
    %7 = arith.addf %4, %6 : vector<3x256xf32>
    %c0_6 = arith.constant 0 : index
    %c0_7 = arith.constant 0 : index
    %c0_8 = arith.constant 0 : index
    %8 = vector.load %arg5[%c0_6, %c0_7, %c0_8] : memref<1x3x256xf32, #tpu.memory_space<vmem>>, vector<1x3x256xf32>
    %9 = vector.shape_cast %8 : vector<1x3x256xf32> to vector<3x256xf32>
    %10 = vector.shape_cast %7 : vector<3x256xf32> to vector<1x3x256xf32>
    tpu.vector_store %arg5[%c0_6, %c0_7, %c0_8], %10 {strides = array<i32>} : memref<1x3x256xf32, #tpu.memory_space<vmem>>, vector<1x3x256xf32>,
    return
  }
  func.func @transform_0(%arg0: i32, %arg1: i32) -> (i32, i32, i32) {
    %c0_i32 = arith.constant 0 : i32
    %c0_i32_0 = arith.constant 0 : i32
    return %arg0, %c0_i32, %arg1 : i32, i32, i32
  }
  func.func @transform_1(%arg0: i32, %arg1: i32) -> (i32, i32) {
    %c0_i32 = arith.constant 0 : i32
    %c0_i32_0 = arith.constant 0 : i32
    %c0_i32_1 = arith.constant 0 : i32
    return %c0_i32, %c0_i32_0 : i32, i32
  }
  func.func @transform_2(%arg0: i32, %arg1: i32) -> (i32, i32) {
    %c0_i32 = arith.constant 0 : i32
    %c0_i32_0 = arith.constant 0 : i32
    %c0_i32_1 = arith.constant 0 : i32
    return %c0_i32, %c0_i32_0 : i32, i32
  }
  func.func @transform_3(%arg0: i32, %arg1: i32) -> (i32, i32, i32) {
    %c0_i32 = arith.constant 0 : i32
    %c0_i32_0 = arith.constant 0 : i32
    return %arg0, %c0_i32, %arg1 : i32, i32, i32
  }
}

</mosaic_0001>

<bundles_post_ra>
// kernel: _lambda_.1
= control target key start
LH: loop header
LB: loop body
LE: loop exit
PB: predicated region body
PF: predicated region fallthrough
CT: control target
= control target key end

     0   :  { %s475_s12 = smov 0   ;;  %s477_s13 = smov 0   ;;  %s514_s0 = inlined_call_operand.vmem [shape: f32[2,8,256], index: 0, kind: input, shape index: {}]   ;;  %s515_s1 = inlined_call_operand.vmem [shape: f32[8,8], index: 1, kind: input, shape index: {}]   ;;  %s516_s2 = inlined_call_operand.vmem [shape: f32[3,1], index: 2, kind: input, shape index: {}]   ;;  %s517_s3 = inlined_call_operand.vmem [shape: f32[2,3,256], index: 3, kind: output, shape index: {}]  }
   0x1   :  { %s479_s14 = smov 0  }
   0x2 LB: > { %s25_s15 = sadd.s32 1, %s447_s13  ;;  %p392_p0 = scmp.ge.s32.totalorder %s451_s14, 1  ;;  %s451_s14 = sphi %s479_s14, %s13_s14   ;;  %s447_s13 = sphi %s477_s13, %s519_s13   ;;  %s443_s12 = sphi %s475_s12, %s518_s12  }
   0x3   : > { %p27_p1 = scmp.ge.s32.totalorder %s25_s15, 2  ;;  %p158_p2 = scmp.lt.s32.totalorder %s451_s14, 3 }
   0x5   : > { %s521_s15 = smov (%p27_p1, %s25_s15), 0  ;;  %p159_p3 = pnand %p392_p0, %p158_p2 }
   0x6   : > { %p191_p4 = scmp.lt.s32.totalorder (!%p159_p3), %s443_s12, 1 }
   0x7   : > { %162 = sbr.rel (%p159_p3) target bundleno = 218 (0xda), region = 32 }
   0xc   : > { %v453_v0 = vmov 0.0   ;;  %v454_v1 = vmov 0   ;;  %v288_v2 = vld [vmem:[%s516_s2] sm:$0x7]  ;;  %s523_s12 = smov (!%p191_p4, %s443_s12), 1  ;;  %vm213_vm0 = vcmask 64512  }
   0xd   : > { %281 = vmatprep.mubr.f32.mxu0 %v453_v0  ;;  %428 = vset.pattern.permute.xlu0 %v454_v1  ;;  %s400_s18 = sshll.u32 %s523_s12, 4  ;;  %v210_v5 = vld [vmem:[%s515_s1] sm:$0xff]  ;;  %s401_s24 = sshll.u32 %s523_s12, 3 }
   0xe   : > { %291 = vperm.xlu0 %428, %v288_v2   ;;  %s198_s21 = scalar_lea.vmem %s514_s0, %s400_s18  ;;  %s208_s27 = scalar_lea.vmem %s517_s3, %s401_s24 }
   0xf   : > { %v212_v3 = vld [vmem:[%s198_s21 + $0x8] sm:$0xff]  ;;  %v211_v4 = vld [vmem:[%s198_s21] sm:$0xff] }
  0x10   : > { %247 = vmatprep.subr.mxu0 %v212_v3 }
  0x11   : > { %248 = vmatpush1.msra.mxu0 %v211_v4 }
  0x12   : > { %397 = vmatmul.mubr.msk.f32.vlgmr.msra.gmra.mxu0 %vm213_vm0, %v210_v5 }
  0x89   : > { %v292_v6 = vpop.permute.xlu0 %291 }
  0xd2   : > { %v283_v7 = vpop.f32.mrf.mxu0 }
  0xd3   : > { %v294_v9 = vadd.f32 %v292_v6, %v283_v7 }
  0xd4   : > { %v285_v8 = vpop.f32.mrf.mxu0 }
  0xd5   : > { %v295_v10 = vadd.f32 %v292_v6, %v285_v8 }
  0xd7   : > { %v298_v11 = vcombine.low %v294_v9, %v295_v10 }
  0xd9   : > { %300 = vst [vmem:[%s208_s27] sm:$0x77] %v298_v11 }
  0xda PF: > { %s13_s14 = sadd.s32 1, %s451_s14   ;;  %s518_s12 = smov %s447_s13 }
  0xdb   : > { %p10_p5 = scmp.ge.s32.totalorder %s13_s14, 4   ;;  %s519_s13 = smov %s521_s15 }
  0xdd   :  { %12 = sbr.rel (!%p10_p5) target bundleno = 2 (0x2), region = 62 }

</bundles_post_ra>
